<compile_context>
chip_gen: v6e
topology: v6e:2x2x1
jax: 0.10.0
libtpu: 0.0.40
codegen_flags: <defaults>
</compile_context>

<pallas_src>
import jax
import jax.numpy as jnp
from jax import lax
from jax.experimental import pallas as pl
from jax.experimental.pallas import tpu as pltpu

_F_NORMALIZE_EPS = 1e-12  # F.normalize default (module's self.eps is unused)


# ----------------------------------------------------------------------------- helpers
def _round_up(x, m):
    return ((x + m - 1) // m) * m


def _cdiv(a, b):
    return (a + b - 1) // b


def _sublane_multiple(dtype):
    itemsize = jnp.dtype(dtype).itemsize
    if itemsize >= 4:
        return 8
    if itemsize == 2:
        return 16
    return 32


def _vmem_capacity_bytes():
    # Per-generation VMEM budget; fall back to 64 MiB (v7x per-TC, tightest).
    try:
        info = pltpu.get_tpu_info()
        cap = getattr(info, "vmem_capacity_bytes", None)
        if cap:
            return int(cap)
    except Exception:
        pass
    return 64 * 1024 * 1024


def _compiler_params(block_bytes, semantics, vmem_cap):
    # Cover double-buffered in+out blocks (+ margin); no 32 MiB floor so tiny
    # blocks on a 64 MiB (v7x) part don't hog scoped VMEM; never more than
    # 3/4 of physical VMEM so the same code path works on v5e/v6e/v7x.
    limit = max(6 * int(block_bytes) + (2 << 20), 4 << 20)
    limit = int(min(limit, (vmem_cap * 3) // 4))
    return pltpu.CompilerParams(
        dimension_semantics=semantics, vmem_limit_bytes=limit
    )


# ----------------------------------------------------------------------------- kernels
def _maxnorm_kernel(x_ref, o_ref):
    """Single pass: whole reduction axis resident in one (tr, L) block."""
    x = x_ref[...]
    # abs-max per row in native dtype; clamp + reciprocal on the tiny (tr,1)
    # vector in f32 (avoids fp16/bf16 eps underflow), then one VPU multiply.
    m = jnp.max(jnp.abs(x), axis=-1, keepdims=True).astype(jnp.float32)
    inv = 1.0 / jnp.maximum(m, jnp.float32(_F_NORMALIZE_EPS))
    if jnp.dtype(o_ref.dtype).itemsize <= 2:
        # Do the big broadcast multiply in the narrow dtype (half the VALU
        # work / vreg pressure); the reciprocal itself stays f32-accurate.
        inv = inv.astype(o_ref.dtype)
    o_ref[...] = (x * inv).astype(o_ref.dtype)


def _make_rowinv_kernel(L, tl):
    """Two-phase pass 1: per-row abs-max over L-tiles -> clamped reciprocal."""
    need_mask = (L % tl) != 0  # static: only mask when the last L-tile is ragged

    def kernel(x_ref, inv_ref, acc_ref):
        j = pl.program_id(1)

        @pl.when(j == 0)
        def _init():
            acc_ref[...] = jnp.zeros_like(acc_ref)

        ax = jnp.abs(x_ref[...])
        if need_mask:
            # Zero out-of-range lanes so garbage in the ragged last tile
            # cannot inflate the row max.
            lane = lax.broadcasted_iota(jnp.int32, ax.shape, 1)
            ax = jnp.where(j * tl + lane < L, ax, jnp.zeros_like(ax))
        tile_max = jnp.max(ax, axis=-1, keepdims=True).astype(jnp.float32)
        acc_ref[...] = jnp.maximum(acc_ref[...], tile_max)

        @pl.when(j == pl.num_programs(1) - 1)
        def _finalize():
            # Store the clamped reciprocal so pass 2 is a pure multiply.
            inv_ref[...] = 1.0 / jnp.maximum(acc_ref[...], jnp.float32(_F_NORMALIZE_EPS))

    return kernel


def _scale_kernel(x_ref, inv_ref, o_ref):
    """Two-phase pass 2: scale each L-tile by the per-row reciprocal."""
    inv = inv_ref[...]  # (tr, 1) f32
    if jnp.dtype(o_ref.dtype).itemsize <= 2:
        inv = inv.astype(o_ref.dtype)
    o_ref[...] = (x_ref[...] * inv).astype(o_ref.dtype)


# ----------------------------------------------------------------------------- pallas wrappers
def _max_norm_single_pass(x2, tr, vmem_cap):
    N, L = x2.shape
    itemsize = jnp.dtype(x2.dtype).itemsize
    block_bytes = tr * L * itemsize
    return pl.pallas_call(
        _maxnorm_kernel,
        out_shape=jax.ShapeDtypeStruct((N, L), x2.dtype),
        grid_spec=pltpu.PrefetchScalarGridSpec(
            num_scalar_prefetch=0,
            grid=(_cdiv(N, tr),),  # ragged last row block: OOB rows are discarded
            in_specs=[pl.BlockSpec((tr, L), lambda i: (i, 0))],
            out_specs=pl.BlockSpec((tr, L), lambda i: (i, 0)),
        ),
        compiler_params=_compiler_params(block_bytes, ("parallel",), vmem_cap),
        cost_estimate=pl.CostEstimate(
            flops=2 * N * L,
            transcendentals=0,
            bytes_accessed=2 * N * L * itemsize,
        ),
    )(x2)


def _max_norm_two_phase(x2, tr, tl, vmem_cap):
    N, L = x2.shape
    itemsize = jnp.dtype(x2.dtype).itemsize
    block_bytes = tr * tl * itemsize
    grid = (_cdiv(N, tr), _cdiv(L, tl))

    # Pass 1: per-row abs-max over L-tiles (reduction axis last, 'arbitrary'),
    # finalized into the clamped reciprocal.
    # TODO(synk): when N < 2*sublane (row grid == 1) the parallel axis has a
    # single block, so one v7x TensorCore idles during this pass; splitting L
    # into a leading parallel axis with a tiny combine epilogue would fix it.
    row_inv = pl.pallas_call(
        _make_rowinv_kernel(L, tl),
        out_shape=jax.ShapeDtypeStruct((N, 1), jnp.float32),
        grid_spec=pltpu.PrefetchScalarGridSpec(
            num_scalar_prefetch=0,
            grid=grid,
            in_specs=[pl.BlockSpec((tr, tl), lambda i, j: (i, j))],
            out_specs=pl.BlockSpec((tr, 1), lambda i, j: (i, 0)),
            scratch_shapes=[pltpu.VMEM((tr, 1), jnp.float32)],
        ),
        compiler_params=_compiler_params(
            block_bytes, ("parallel", "arbitrary"), vmem_cap
        ),
        cost_estimate=pl.CostEstimate(
            flops=2 * N * L,
            transcendentals=0,
            bytes_accessed=N * L * itemsize + N * 4,
        ),
    )(x2)

    # Pass 2: embarrassingly parallel scale of every L-tile. The ragged last
    # L-tile / row block needs no masking: OOB stores are discarded.
    out = pl.pallas_call(
        _scale_kernel,
        out_shape=jax.ShapeDtypeStruct((N, L), x2.dtype),
        grid_spec=pltpu.PrefetchScalarGridSpec(
            num_scalar_prefetch=0,
            grid=grid,
            in_specs=[
                pl.BlockSpec((tr, tl), lambda i, j: (i, j)),
                pl.BlockSpec((tr, 1), lambda i, j: (i, 0)),
            ],
            out_specs=pl.BlockSpec((tr, tl), lambda i, j: (i, j)),
        ),
        compiler_params=_compiler_params(
            block_bytes, ("parallel", "parallel"), vmem_cap
        ),
        cost_estimate=pl.CostEstimate(
            flops=N * L,
            transcendentals=0,
            bytes_accessed=2 * N * L * itemsize + N * 4,
        ),
    )(x2, row_inv)
    return out


# ----------------------------------------------------------------------------- public API
def max_norm(x, per_channel=True, *, target_block_bytes=None, max_block_bytes=None):
    """Pallas implementation of MaxNorm.forward.

    Args:
      x: float array of shape (bs, c, d, h, w).
      per_channel: normalize per (bs, c) slice if True, per bs slice otherwise.
      target_block_bytes / max_block_bytes: optional overrides for the VMEM
        block budget (used by tests to force the L-tiled path on small shapes).

    Returns:
      Array of the same shape/dtype as x.
    """
    assert x.ndim == 5, f"input should be a 5D tensor, got {x.ndim}D"
    bs, c, d, h, w = x.shape

    if per_channel:
        N, L = bs * c, d * h * w
    else:
        N, L = bs, c * d * h * w
    x2 = x.reshape(N, L)

    dtype = x2.dtype
    itemsize = jnp.dtype(dtype).itemsize
    sub = _sublane_multiple(dtype)
    vmem_cap = _vmem_capacity_bytes()

    # Per-generation budgets derived from VMEM capacity:
    #   target block ~ cap/8 (16 MiB on 128 MiB v5e/v6e, 8 MiB on 64 MiB v7x),
    #   single-pass cutoff ~ cap/6 (double-buffered in+out still fits).
    if max_block_bytes is None:
        max_block_bytes = vmem_cap // 6
    if target_block_bytes is None:
        target_block_bytes = vmem_cap // 8
    target_block_bytes = min(int(target_block_bytes), int(max_block_bytes))
    target_block_bytes = max(target_block_bytes, sub * 128 * itemsize)

    row_bytes = L * itemsize

    if sub * row_bytes <= max_block_bytes:
        # Single-pass: whole row fits in one block (2 HBM passes total).
        tr = max(sub, ((target_block_bytes // row_bytes) // sub) * sub)
        tr = min(tr, _round_up(N, sub))
        # Keep >= 2 blocks on the parallel axis when possible (v7x megacore).
        if _cdiv(N, tr) < 2 and N > sub:
            tr_half = _round_up(_cdiv(N, 2), sub)
            if tr_half < N:
                tr = tr_half
        out2 = _max_norm_single_pass(x2, tr, vmem_cap)
    else:
        # Large volume: tile along L too (two-phase, 3 HBM passes).
        tr = sub
        tl = max(128, ((target_block_bytes // (tr * itemsize)) // 128) * 128)
        tl = min(tl, _round_up(L, 128))
        out2 = _max_norm_two_phase(x2, tr, tl, vmem_cap)

    return out2.reshape(bs, c, d, h, w)


# ----------------------------------------------------------------------------- reference + test
def _reference(x, per_channel=True):
    dims = (-3, -2, -1) if per_channel else (-4, -3, -2, -1)
    m = jnp.max(jnp.abs(x).astype(jnp.float32), axis=dims, keepdims=True)
    return (x / jnp.maximum(m, jnp.float32(_F_NORMALIZE_EPS))).astype(x.dtype)


if __name__ == "__main__":
    key = jax.random.PRNGKey(0)
    k1, k2 = jax.random.split(key)

    bs, c, d, h, w = 2, 4, 4, 8, 8  # small 5D input (bs, c, d, h, w)
    x = jax.random.normal(k1, (bs, c, d, h, w), dtype=jnp.float32) * 3.0

    # 1) per_channel=True, default budget (single-pass, VMEM-sized row tile).
    y = jax.block_until_ready(max_norm(x, per_channel=True))
    assert jnp.allclose(y, _reference(x, True), atol=1e-5, rtol=1e-5), \
        "per_channel=True mismatch"

    # 2) per_channel=False (N=2 -> single ragged row block, no padding).
    y2 = jax.block_until_ready(max_norm(x, per_channel=False))
    assert jnp.allclose(y2, _reference(x, False), atol=1e-5, rtol=1e-5), \
        "per_channel=False mismatch"

    # 3) Force the two-phase (L-tiled) large-volume path with a tiny budget.
    y3 = jax.block_until_ready(
        max_norm(x, per_channel=True, target_block_bytes=4096, max_block_bytes=4096))
    assert jnp.allclose(y3, _reference(x, True), atol=1e-5, rtol=1e-5), \
        "two-phase per_channel=True mismatch"

    y4 = jax.block_until_ready(
        max_norm(x, per_channel=False, target_block_bytes=4096, max_block_bytes=4096))
    assert jnp.allclose(y4, _reference(x, False), atol=1e-5, rtol=1e-5), \
        "two-phase per_channel=False mismatch"

    # 4) Odd (non-128-multiple) spatial volume: exercises ragged blocks in the
    #    single-pass path and the masked ragged L-tile in the two-phase path.
    xo = jax.random.normal(k2, (2, 3, 3, 5, 7), dtype=jnp.float32) * 2.0
    y5 = jax.block_until_ready(max_norm(xo, per_channel=True))
    assert jnp.allclose(y5, _reference(xo, True), atol=1e-5, rtol=1e-5), \
        "odd-shape single-pass mismatch"
    y6 = jax.block_until_ready(
        max_norm(xo, per_channel=True, max_block_bytes=2048))
    assert jnp.allclose(y6, _reference(xo, True), atol=1e-5, rtol=1e-5), \
        "odd-shape two-phase (masked ragged L-tile) mismatch"

    print("KERNEL_OK")
</pallas_src>

<mosaic_0001>
module attributes {stable_mosaic.version = 11 : i64} {
  func.func @_maxnorm_kernel(%arg0: i32, %arg1: memref<8x256xf32, #tpu.memory_space<vmem>>, %arg2: memref<8x256xf32, #tpu.memory_space<vmem>>) attributes {dimension_semantics = [#tpu.dimension_semantics<parallel>], iteration_bounds = array<i64: 1>, scalar_prefetch = 0 : i64, scratch_operands = 0 : i64, tpu.core_type = #tpu.core_type<tc>, window_params = [{transform_indices = @transform_0, window_bounds = array<i64: 8, 256>}, {transform_indices = @transform_1, window_bounds = array<i64: 8, 256>}]} {
    %c0 = arith.constant 0 : index
    %c0_0 = arith.constant 0 : index
    %0 = vector.load %arg1[%c0, %c0_0] : memref<8x256xf32, #tpu.memory_space<vmem>>, vector<8x256xf32>
    %1 = math.absf %0 : vector<8x256xf32>
    %cst = arith.constant dense<0xFF800000> : vector<8xf32>
    %2 = vector.multi_reduction <maximumf>, %1, %cst [1] : vector<8x256xf32> to vector<8xf32>
    %3 = vector.shape_cast %2 : vector<8xf32> to vector<8x1xf32>
    %cst_1 = arith.constant 9.99999996E-13 : f32
    %4 = vector.broadcast %cst_1 : f32 to vector<8x1xf32>
    %5 = arith.maximumf %3, %4 : vector<8x1xf32>
    %cst_2 = arith.constant 1.000000e+00 : f32
    %6 = vector.broadcast %cst_2 : f32 to vector<8x1xf32>
    %7 = arith.divf %6, %5 : vector<8x1xf32>
    %8 = vector.broadcast %7 : vector<8x1xf32> to vector<8x256xf32>
    %9 = arith.mulf %0, %8 : vector<8x256xf32>
    %c0_3 = arith.constant 0 : index
    %c0_4 = arith.constant 0 : index
    %10 = vector.load %arg2[%c0_3, %c0_4] : memref<8x256xf32, #tpu.memory_space<vmem>>, vector<8x256xf32>
    tpu.vector_store %arg2[%c0_3, %c0_4], %9 {strides = array<i32>} : memref<8x256xf32, #tpu.memory_space<vmem>>, vector<8x256xf32>,
    return
  }
  func.func @transform_0(%arg0: i32) -> (i32, i32) {
    %c0_i32 = arith.constant 0 : i32
    %c0_i32_0 = arith.constant 0 : i32
    return %arg0, %c0_i32 : i32, i32
  }
  func.func @transform_1(%arg0: i32) -> (i32, i32) {
    %c0_i32 = arith.constant 0 : i32
    %c0_i32_0 = arith.constant 0 : i32
    return %arg0, %c0_i32 : i32, i32
  }
}

</mosaic_0001>

<bundles_post_ra>
// kernel: tpu_custom_call.1
= control target key start
LH: loop header
LB: loop body
LE: loop exit
PB: predicated region body
PF: predicated region fallthrough
CT: control target
= control target key end

     0   :  { %6 = vsyncpa [#allocation3], 0  ;;  %s116_s0 = inlined_call_operand.hbm [shape: f32[8,256], index: 0, kind: input, shape index: {}]   ;;  %s117_s1 = inlined_call_operand.hbm [shape: f32[8,256], index: 1, kind: output, shape index: {}]  }
   0x1   :  { %7 = vsyncpa [#allocation4], 0  ;;  %s98_s6 = smov [#allocation2]  }
   0x2   :  { %s14_s7 = sshll.u32 %s98_s6, 4  ;;  %s15_s7 = int_to_ptr.vmem [resolvable:$true] %s14_s7 }
   0x3   :  { %s62_s8 = scalar_lea.vmem %s15_s7, 256  ;;  %p67_p1 = scmp.lt.s32.totalorder %s15_s7, %s15_s7 }
   0x4   :  { %p63_p0 = scmp.ne.s32.totalorder %s15_s7, %s62_s8  ;;  %p68_p2 = scmp.lt.s32.totalorder %s62_s8, %s62_s8 }
   0x6   :  { %p69_p3 = por %p68_p2, %p67_p1 }
   0x8   :  { %p70_p4 = pnand %p69_p3, %p63_p0 }
   0xa   :  { %73 = shalt.err (!%p70_p4)
}
   0xb   :  { %17 = dma.hbm_to_vmem [thread:$0]  %s116_s0, 256, %s15_s7, [#allocation3]  }
   0xc   :  { %94 = dma.done.wait [#allocation3], 256  }
   0xd   :  { %95 = vsyncadd [#allocation3], 4294967040  ;;  %v21_v0 = vld [vmem:[#allocation2] sm:$0xff]  ;;  %v22_v1 = vld [vmem:[#allocation2 + $0x8] sm:$0xff]  ;;  %s99_s11 = smov [#allocation5]  }
   0xe   :  { %v23_v2 = vand.u32 2147483647, %v21_v0  ;;  %v24_v3 = vand.u32 2147483647, %v22_v1  ;;  %s41_s12 = sshll.u32 %s99_s11, 4  ;;  %s42_s12 = int_to_ptr.vmem [resolvable:$true] %s41_s12 }
   0xf   :  { %s74_s0 = scalar_lea.vmem %s42_s12, 256  ;;  %p79_p6 = scmp.lt.s32.totalorder %s42_s12, %s42_s12 }
  0x10   :  { %v25_v4 = vmax.f32.f32 %v23_v2, %v24_v3  ;;  %p75_p5 = scmp.ne.s32.totalorder %s42_s12, %s74_s0  ;;  %p80_p7 = scmp.lt.s32.totalorder %s74_s0, %s74_s0 }
  0x12   :  { %26 = vmax.xlane.f32.xlu0 %v25_v4  ;;  %p81_p8 = por %p80_p7, %p79_p6 }
  0x14   :  { %p82_p9 = pnand %p81_p8, %p75_p5 }
  0x9b   :  { %v27_v5 = vpop.xlane.xlu0 %26 }
  0x9c   :  { %v28_v6 = vmax.f32 %v27_v5, 1e-12 }
  0x9e   :  { %52 = vrcp.f32 %v28_v6 }
  0xab   :  { %v53_v7 = vpop.eup %52 }
  0xac   :  { %v31_v8 = vmul.f32 %v53_v7, %v21_v0  ;;  %v32_v9 = vmul.f32 %v53_v7, %v22_v1 }
  0xae   :  { %33 = vst [vmem:[#allocation5] sm:$0xff] %v31_v8  ;;  %34 = vst [vmem:[#allocation5 + $0x8] sm:$0xff] %v32_v9 }
  0xaf   :  { %85 = shalt.err (!%p82_p9)
}
  0xb0   :  { %44 = dma.vmem_to_hbm [thread:$0]  %s42_s12, 256, %s117_s1, [#allocation4]  }
  0xb1   :  { %96 = dma.done.wait [#allocation4], 256  }
  0xb2   :  { %97 = vsyncadd [#allocation4], 4294967040 }
  0xb3   :  { %48 = vsyncpa [#allocation3], 1 }
  0xb4   :  { %49 = vsyncpa [#allocation4], 1 }

</bundles_post_ra>
